<compile_context>
chip_gen: v7x
topology: tpu7x:2x2x1
jax: 0.10.0
libtpu: 0.0.40
codegen_flags: <defaults>
</compile_context>

<pallas_src>
import numpy as np
import jax
import jax.numpy as jnp
from jax.experimental import pallas as pl
from jax.experimental.pallas import tpu as pltpu

# ---------------------------------------------------------------------------
# Model dimensions (small synthetic config)
# ---------------------------------------------------------------------------
B = 2              # batch of computation graphs
NW = 6             # weighted nodes per graph
NR = 6             # regular nodes per graph
NTOTPG = NW + NR   # nodes per graph
NTOT = B * NTOTPG  # 24 flattened node rows
D = 32             # per-segment (p/s/c) graph-embedding dim
H = 3 * D          # hidden_size of PSCERegressor (= concat of p,s,c embeddings)
HP = 128           # lane-padded hidden per MLP branch
NSEG = 3           # p / s / c
SEGROWS = 8        # sublane-aligned rows per segment block in pooled output
POOLROWS = NSEG * SEGROWS   # 24
OP = 8             # small output head width (lanes 0..1 = mu, var)
VOCAB = 8          # node-op vocabulary for the stand-in embed layer
VAR = True         # PSCERegressor(var=True) -> output [B, 2]
ACTIV = None       # activ=None (default)

NBRANCH = 2 if VAR else 1
HCAT = NBRANCH * HP          # 256: concatenated (lane-padded) hidden of branches

# Weight-slab row layout: [W12_cat | W_enc | W_out^T]
R_W12 = 0
R_WENC = H                   # 96
R_WOUTT = H + D              # 128
WSLAB_ROWS = H + D + OP      # 136
BSLAB_ROWS = 8               # row 0 = b_enc, row 1 = b12_cat, row 2 = b_out

assert H == NSEG * D
assert B <= SEGROWS and NBRANCH <= OP


# ---------------------------------------------------------------------------
# Fused Pallas kernel: encoder + combined masked mean pooling + folded MLPs
# ---------------------------------------------------------------------------
def _fused_kernel(x_ref, pool_ref, wslab_ref, bslab_ref, o_ref):
    # Per-node encoder stand-in over all B*(NW+NR) nodes at once: [NTOT, D].
    wenc = wslab_ref[R_WENC:R_WENC + D, 0:D]                 # [D, D]
    b_enc = bslab_ref[0:1, 0:D]                              # [1, D]
    enc = jnp.tanh(
        jnp.dot(x_ref[...], wenc, preferred_element_type=jnp.float32) + b_enc)

    # ONE combined masked-mean-pool matmul (1/len folded into pool matrix).
    # Row layout of g: rows [s*SEGROWS + b] hold segment s of graph b
    # (rows b>=B of each block are zero padding).
    g = jnp.dot(pool_ref[...], enc, preferred_element_type=jnp.float32)  # [POOLROWS, D]

    # Folded (W1@W2) linear of BOTH branches, split by p/s/c feature block so no
    # in-kernel reshape/concat is needed; slices are sublane-aligned (0/8/16).
    b12 = bslab_ref[1:2, :]                                  # [1, HCAT]
    h = (jnp.dot(g[0:SEGROWS], wslab_ref[R_W12 + 0 * D:R_W12 + 1 * D, :],
                 preferred_element_type=jnp.float32)
         + jnp.dot(g[SEGROWS:2 * SEGROWS], wslab_ref[R_W12 + 1 * D:R_W12 + 2 * D, :],
                   preferred_element_type=jnp.float32)
         + jnp.dot(g[2 * SEGROWS:3 * SEGROWS], wslab_ref[R_W12 + 2 * D:R_W12 + 3 * D, :],
                   preferred_element_type=jnp.float32)
         + b12)
    h = jnp.maximum(h, 0.0)                                  # [SEGROWS, HCAT]

    # Folded (W3@W4@Wr) output head, stored transposed ([OP, HCAT]) inside the
    # weight slab; transposed-RHS contraction keeps it a single tiny MXU op.
    wout_t = wslab_ref[R_WOUTT:R_WOUTT + OP, :]              # [OP, HCAT]
    bout = bslab_ref[2:3, 0:OP]                              # [1, OP]
    out = jax.lax.dot_general(h, wout_t, (((1,), (1,)), ((), ())),
                              preferred_element_type=jnp.float32) + bout
    o_ref[...] = out                                         # [SEGROWS, OP]


def fused_forward_pallas(x, pool, wslab, bslab):
    vmem = pl.BlockSpec(memory_space=pltpu.MemorySpace.VMEM)
    flops = 2 * (NTOT * D * D + POOLROWS * NTOT * D
                 + NSEG * SEGROWS * D * HCAT + SEGROWS * HCAT * OP)
    bytes_accessed = 4 * (NTOT * D + POOLROWS * NTOT + WSLAB_ROWS * HCAT
                          + BSLAB_ROWS * HCAT + SEGROWS * OP)
    return pl.pallas_call(
        _fused_kernel,
        out_shape=jax.ShapeDtypeStruct((SEGROWS, OP), jnp.float32),
        in_specs=[vmem, vmem, vmem, vmem],
        out_specs=vmem,
        cost_estimate=pl.CostEstimate(flops=flops, transcendentals=NTOT * D,
                                      bytes_accessed=bytes_accessed),
        # No grid / vmem_limit: ~160 KB resident, single block, one TC.
        # TODO(synk): at large B add a leading grid over B with
        # dimension_semantics=("parallel",) to use both v7x TensorCores.
    )(x, pool, wslab, bslab)


# ---------------------------------------------------------------------------
# Plain-JAX glue: injected embed_layer stand-in
# ---------------------------------------------------------------------------
def embed_layer(params, regular_node_inds, regular_node_shapes,
                weighted_node_inds, weighted_node_shapes,
                weighted_node_kernels, weighted_node_bias):
    # TODO(synk): injected embed layer has no definition in the reference.
    w_emb = (params["emb_w"][weighted_node_inds]
             + weighted_node_shapes @ params["W_shape_w"]
             + weighted_node_kernels @ params["W_kernel"]
             + weighted_node_bias @ params["W_bias"])
    r_emb = (params["emb_r"][regular_node_inds]
             + regular_node_shapes @ params["W_shape_r"])
    return jnp.concatenate([w_emb, r_emb], axis=1)           # [B, NW+NR, D]


# ---------------------------------------------------------------------------
# Cached static pooling matrix (built once per distinct offset bookkeeping)
# ---------------------------------------------------------------------------
_POOL_CACHE = {}


def get_pool_matrix(reg_off, w_offs, r_offs):
    key = (int(reg_off),
           tuple(int(v) for v in w_offs[0]), tuple(int(v) for v in w_offs[1]),
           tuple(int(v) for v in r_offs[0]), tuple(int(v) for v in r_offs[1]))
    cached = _POOL_CACHE.get(key)
    if cached is not None:
        return cached
    pool = np.zeros((POOLROWS, NTOT), dtype=np.float32)
    for b in range(B):
        w0, w1 = int(w_offs[0][b]), int(w_offs[1][b])
        r0, r1 = int(r_offs[0][b]), int(r_offs[1][b])
        segs = [  # local node indices within graph b ([weighted | regular])
            list(range(0, w0)) + [reg_off + j for j in range(0, r0)],      # p
            list(range(w0, w1)) + [reg_off + j for j in range(r0, r1)],    # s
            list(range(w1, NW)) + [reg_off + j for j in range(r1, NR)],    # c
        ]
        for s, locs in enumerate(segs):
            inv = 1.0 / max(len(locs), 1)   # empty-segment guard (ref would NaN)
            for j in locs:
                pool[s * SEGROWS + b, b * NTOTPG + j] = inv
    arr = jnp.asarray(pool)
    _POOL_CACHE[key] = arr
    return arr


# ---------------------------------------------------------------------------
# One-time algebraic folding + packing of all kernel-resident parameters
# ---------------------------------------------------------------------------
def fold_and_pack_params(params):
    # Folding L1,L2 -> W12 and L3,L4,regressor -> W34r is exact ONLY for
    # activ=None (no nonlinearity between those layers).
    assert ACTIV is None, "exact weight folding requires activ=None"
    branches = [(params["post_proj"], params["regressor"])]
    if VAR:
        branches.append((params["var_post_proj"], params["var_regressor"]))
    wslab = jnp.zeros((WSLAB_ROWS, HCAT), jnp.float32)
    bslab = jnp.zeros((BSLAB_ROWS, HCAT), jnp.float32)
    for i, (pp, rg) in enumerate(branches):
        W12 = pp["W1"] @ pp["W2"]                                    # [H, H]
        b12 = pp["b1"] @ pp["W2"] + pp["b2"]                         # [1, H]
        W34r = pp["W3"] @ pp["W4"] @ rg["W"]                         # [H, 1]
        b34r = (pp["b3"] @ pp["W4"] + pp["b4"]) @ rg["W"] + rg["b"]  # [1, 1]
        c0 = i * HP
        wslab = wslab.at[R_W12:R_W12 + H, c0:c0 + H].set(W12)
        bslab = bslab.at[1, c0:c0 + H].set(b12[0])
        wslab = wslab.at[R_WOUTT + i, c0:c0 + H].set(W34r[:, 0])
        bslab = bslab.at[2, i].set(b34r[0, 0])
    wslab = wslab.at[R_WENC:R_WENC + D, 0:D].set(params["W_enc"])
    bslab = bslab.at[0, 0:D].set(params["b_enc"])
    return wslab, bslab


# ---------------------------------------------------------------------------
# Forward
# ---------------------------------------------------------------------------
@jax.jit
def _forward_jit(embed_params, regular_node_inds, regular_node_shapes,
                 weighted_node_inds, weighted_node_shapes,
                 weighted_node_kernels, weighted_node_bias,
                 pool, wslab, bslab):
    node_embedding = embed_layer(embed_params, regular_node_inds,
                                 regular_node_shapes, weighted_node_inds,
                                 weighted_node_shapes, weighted_node_kernels,
                                 weighted_node_bias)
    x = node_embedding.reshape(NTOT, D)        # flattened node rows (no gather)
    out_pad = fused_forward_pallas(x, pool, wslab, bslab)
    return out_pad[:B, :NBRANCH]               # [B, 2] (or [B, 1])


def make_psce_forward(params):
    """Fold/pack params ONCE; return a per-call forward closure."""
    wslab, bslab = fold_and_pack_params(params)
    embed_keys = ("emb_w", "emb_r", "W_shape_w", "W_kernel", "W_bias", "W_shape_r")
    embed_params = {k: params[k] for k in embed_keys}

    def forward(regular_node_inds, regular_node_shapes,
                weighted_node_inds, weighted_node_shapes,
                weighted_node_kernels, weighted_node_bias,
                edge_tsr_list, batch_last_node_idx_list,
                batch_reg_node_offset, batch_w_offsets, batch_r_offsets,
                index=None, ext_feat=None):
        # edge_tsr_list / batch_last_node_idx_list unused by the stand-in
        # encoder/aggregator.  # TODO(synk): real injected GNN modules undefined.
        del edge_tsr_list, batch_last_node_idx_list, index, ext_feat
        pool = get_pool_matrix(batch_reg_node_offset,
                               batch_w_offsets, batch_r_offsets)
        return _forward_jit(embed_params, regular_node_inds, regular_node_shapes,
                            weighted_node_inds, weighted_node_shapes,
                            weighted_node_kernels, weighted_node_bias,
                            pool, wslab, bslab)

    return forward


# ---------------------------------------------------------------------------
# Unfused pure-JAX reference (tolerance check for folding + packing + pooling)
# ---------------------------------------------------------------------------
def reference_forward(params, regular_node_inds, regular_node_shapes,
                      weighted_node_inds, weighted_node_shapes,
                      weighted_node_kernels, weighted_node_bias,
                      reg_off, w_offs, r_offs):
    node_embedding = embed_layer(params, regular_node_inds, regular_node_shapes,
                                 weighted_node_inds, weighted_node_shapes,
                                 weighted_node_kernels, weighted_node_bias)
    w_node = node_embedding[:, :reg_off, :]
    r_node = node_embedding[:, reg_off:, :]

    def enc(x):
        return jnp.tanh(x @ params["W_enc"] + params["b_enc"])

    def mlp(x, pp, rg):
        h = x @ pp["W1"] + pp["b1"]
        h = h @ pp["W2"] + pp["b2"]
        h = jnp.maximum(h, 0.0)
        h = h @ pp["W3"] + pp["b3"]
        h = h @ pp["W4"] + pp["b4"]
        return h @ rg["W"] + rg["b"]

    rows = []
    for b in range(B):
        w0, w1 = int(w_offs[0][b]), int(w_offs[1][b])
        r0, r1 = int(r_offs[0][b]), int(r_offs[1][b])
        p = jnp.concatenate([w_node[b, :w0], r_node[b, :r0]], axis=0)
        s = jnp.concatenate([w_node[b, w0:w1], r_node[b, r0:r1]], axis=0)
        c = jnp.concatenate([w_node[b, w1:], r_node[b, r1:]], axis=0)
        rows.append(jnp.concatenate([enc(seg).mean(axis=0) for seg in (p, s, c)],
                                    axis=-1))
    overall = jnp.stack(rows, axis=0)                              # [B, H]
    mu = mlp(overall, params["post_proj"], params["regressor"])
    if VAR:
        var = mlp(overall, params["var_post_proj"], params["var_regressor"])
        return jnp.concatenate([mu, var], axis=1)
    return mu


# ---------------------------------------------------------------------------
# Deterministic parameter construction
# ---------------------------------------------------------------------------
def _mlp_branch(keys):
    n = lambda k, shape: jax.random.normal(k, shape, jnp.float32) * 0.1
    post_proj = {
        "W1": n(keys[0], (H, H)), "b1": n(keys[1], (1, H)),
        "W2": n(keys[2], (H, H)), "b2": n(keys[3], (1, H)),
        "W3": n(keys[4], (H, H)), "b3": n(keys[5], (1, H)),
        "W4": n(keys[6], (H, H)), "b4": n(keys[7], (1, H)),
    }
    regressor = {"W": n(keys[8], (H, 1)), "b": n(keys[9], (1, 1))}
    return post_proj, regressor


def init_params(key):
    ks = jax.random.split(key, 32)
    n = lambda k, shape: jax.random.normal(k, shape, jnp.float32) * 0.1
    post_proj, regressor = _mlp_branch(ks[0:10])
    # Distinct var-branch weights (as-if-trained) so the self-check would catch
    # a mu/var lane swap or duplication in the packed output head.
    var_post_proj, var_regressor = _mlp_branch(ks[10:20])
    return {
        "emb_w": n(ks[20], (VOCAB, D)),
        "emb_r": n(ks[21], (VOCAB, D)),
        "W_shape_w": n(ks[22], (4, D)),
        "W_kernel": n(ks[23], (2, D)),
        "W_bias": n(ks[24], (1, D)),
        "W_shape_r": n(ks[25], (4, D)),
        "W_enc": n(ks[26], (D, D)),
        "b_enc": n(ks[27], (D,)),
        "post_proj": post_proj, "regressor": regressor,
        "var_post_proj": var_post_proj, "var_regressor": var_regressor,
    }


if __name__ == "__main__":
    key = jax.random.PRNGKey(0)
    kp, k1, k2, k3, k4, k5, k6 = jax.random.split(key, 7)

    params = init_params(kp)

    regular_node_inds = jax.random.randint(k1, (B, NR), 0, VOCAB, jnp.int32)
    regular_node_shapes = jax.random.normal(k2, (B, NR, 4), jnp.float32)
    weighted_node_inds = jax.random.randint(k3, (B, NW), 0, VOCAB, jnp.int32)
    weighted_node_shapes = jax.random.normal(k4, (B, NW, 4), jnp.float32)
    weighted_node_kernels = jax.random.normal(k5, (B, NW, 2), jnp.float32)
    weighted_node_bias = jax.random.normal(k6, (B, NW, 1), jnp.float32)

    # Graph bookkeeping (static): edges unused by the stand-in encoder.
    edge_tsr_list = [None, None, None]
    batch_last_node_idx_list = [None, None, None]
    batch_reg_node_offset = NW
    batch_w_offsets = [[2, 3], [4, 5]]   # [w_off0 per graph], [w_off1 per graph]
    batch_r_offsets = [[2, 2], [4, 4]]

    psce_forward = make_psce_forward(params)   # folds/packs weights ONCE

    out = psce_forward(regular_node_inds, regular_node_shapes,
                       weighted_node_inds, weighted_node_shapes,
                       weighted_node_kernels, weighted_node_bias,
                       edge_tsr_list, batch_last_node_idx_list,
                       batch_reg_node_offset, batch_w_offsets, batch_r_offsets)
    out = jax.block_until_ready(out)
    assert out.shape == (B, 2 if VAR else 1)

    # Second call exercises the cached pooling table / compiled path.
    out2 = jax.block_until_ready(
        psce_forward(regular_node_inds, regular_node_shapes,
                     weighted_node_inds, weighted_node_shapes,
                     weighted_node_kernels, weighted_node_bias,
                     edge_tsr_list, batch_last_node_idx_list,
                     batch_reg_node_offset, batch_w_offsets, batch_r_offsets))
    assert float(jnp.max(jnp.abs(out - out2))) == 0.0

    # Tolerance check vs the unfused reference (folding differs only by f32 rounding).
    ref = jax.block_until_ready(
        reference_forward(params, regular_node_inds, regular_node_shapes,
                          weighted_node_inds, weighted_node_shapes,
                          weighted_node_kernels, weighted_node_bias,
                          batch_reg_node_offset, batch_w_offsets, batch_r_offsets))
    assert float(jnp.max(jnp.abs(out - ref))) < 1e-3, (out, ref)

    print("KERNEL_OK")
</pallas_src>

<mosaic_0001>
module attributes {stable_mosaic.version = 11 : i64} {
  func.func @_fused_kernel(%arg0: memref<24x32xf32, #tpu.memory_space<vmem>>, %arg1: memref<24x24xf32, #tpu.memory_space<vmem>>, %arg2: memref<136x256xf32, #tpu.memory_space<vmem>>, %arg3: memref<8x256xf32, #tpu.memory_space<vmem>>, %arg4: memref<8x8xf32, #tpu.memory_space<vmem>>) attributes {dimension_semantics = [], scalar_prefetch = 0 : i64, scratch_operands = 0 : i64, tpu.core_type = #tpu.core_type<tc>} {
    %c96 = arith.constant 96 : index
    %c0 = arith.constant 0 : index
    %0 = vector.load %arg2[%c96, %c0] : memref<136x256xf32, #tpu.memory_space<vmem>>, vector<32x32xf32>
    %c0_0 = arith.constant 0 : index
    %c0_1 = arith.constant 0 : index
    %1 = vector.load %arg3[%c0_0, %c0_1] : memref<8x256xf32, #tpu.memory_space<vmem>>, vector<1x32xf32>
    %c0_2 = arith.constant 0 : index
    %c0_3 = arith.constant 0 : index
    %2 = vector.load %arg0[%c0_2, %c0_3] : memref<24x32xf32, #tpu.memory_space<vmem>>, vector<24x32xf32>
    %cst = arith.constant dense<0.000000e+00> : vector<24x32xf32>
    %3 = tpu.matmul %2, %0, %cst {dimension_numbers = #tpu.dot_dimension_numbers<[1], [0], [0], [1], [0, 0, 1, 1], [], []>} : vector<24x32xf32>, vector<32x32xf32>, vector<24x32xf32> -> vector<24x32xf32>
    %4 = vector.broadcast %1 : vector<1x32xf32> to vector<24x32xf32>
    %5 = arith.addf %3, %4 : vector<24x32xf32>
    %6 = math.tanh %5 : vector<24x32xf32>
    %c0_4 = arith.constant 0 : index
    %c0_5 = arith.constant 0 : index
    %7 = vector.load %arg1[%c0_4, %c0_5] : memref<24x24xf32, #tpu.memory_space<vmem>>, vector<24x24xf32>
    %cst_6 = arith.constant dense<0.000000e+00> : vector<24x32xf32>
    %8 = tpu.matmul %7, %6, %cst_6 {dimension_numbers = #tpu.dot_dimension_numbers<[1], [0], [0], [1], [0, 0, 1, 1], [], []>} : vector<24x24xf32>, vector<24x32xf32>, vector<24x32xf32> -> vector<24x32xf32>
    %c1 = arith.constant 1 : index
    %c0_7 = arith.constant 0 : index
    %9 = vector.load %arg3[%c1, %c0_7] : memref<8x256xf32, #tpu.memory_space<vmem>>, vector<1x256xf32>
    %10 = vector.extract_strided_slice %8 {offsets = [0, 0], sizes = [8, 32], strides = [1, 1]} : vector<24x32xf32> to vector<8x32xf32>
    %c0_8 = arith.constant 0 : index
    %c0_9 = arith.constant 0 : index
    %11 = vector.load %arg2[%c0_8, %c0_9] : memref<136x256xf32, #tpu.memory_space<vmem>>, vector<32x256xf32>
    %cst_10 = arith.constant dense<0.000000e+00> : vector<8x256xf32>
    %12 = tpu.matmul %10, %11, %cst_10 {dimension_numbers = #tpu.dot_dimension_numbers<[1], [0], [0], [1], [0, 0, 1, 1], [], []>} : vector<8x32xf32>, vector<32x256xf32>, vector<8x256xf32> -> vector<8x256xf32>
    %13 = vector.extract_strided_slice %8 {offsets = [8, 0], sizes = [8, 32], strides = [1, 1]} : vector<24x32xf32> to vector<8x32xf32>
    %c32 = arith.constant 32 : index
    %c0_11 = arith.constant 0 : index
    %14 = vector.load %arg2[%c32, %c0_11] : memref<136x256xf32, #tpu.memory_space<vmem>>, vector<32x256xf32>
    %cst_12 = arith.constant dense<0.000000e+00> : vector<8x256xf32>
    %15 = tpu.matmul %13, %14, %cst_12 {dimension_numbers = #tpu.dot_dimension_numbers<[1], [0], [0], [1], [0, 0, 1, 1], [], []>} : vector<8x32xf32>, vector<32x256xf32>, vector<8x256xf32> -> vector<8x256xf32>
    %16 = arith.addf %12, %15 : vector<8x256xf32>
    %17 = vector.extract_strided_slice %8 {offsets = [16, 0], sizes = [8, 32], strides = [1, 1]} : vector<24x32xf32> to vector<8x32xf32>
    %c64 = arith.constant 64 : index
    %c0_13 = arith.constant 0 : index
    %18 = vector.load %arg2[%c64, %c0_13] : memref<136x256xf32, #tpu.memory_space<vmem>>, vector<32x256xf32>
    %cst_14 = arith.constant dense<0.000000e+00> : vector<8x256xf32>
    %19 = tpu.matmul %17, %18, %cst_14 {dimension_numbers = #tpu.dot_dimension_numbers<[1], [0], [0], [1], [0, 0, 1, 1], [], []>} : vector<8x32xf32>, vector<32x256xf32>, vector<8x256xf32> -> vector<8x256xf32>
    %20 = arith.addf %16, %19 : vector<8x256xf32>
    %21 = vector.broadcast %9 : vector<1x256xf32> to vector<8x256xf32>
    %22 = arith.addf %20, %21 : vector<8x256xf32>
    %cst_15 = arith.constant 0.000000e+00 : f32
    %23 = vector.broadcast %cst_15 : f32 to vector<8x256xf32>
    %24 = arith.maximumf %22, %23 : vector<8x256xf32>
    %c128 = arith.constant 128 : index
    %c0_16 = arith.constant 0 : index
    %25 = vector.load %arg2[%c128, %c0_16] : memref<136x256xf32, #tpu.memory_space<vmem>>, vector<8x256xf32>
    %c2 = arith.constant 2 : index
    %c0_17 = arith.constant 0 : index
    %26 = vector.load %arg3[%c2, %c0_17] : memref<8x256xf32, #tpu.memory_space<vmem>>, vector<1x8xf32>
    %cst_18 = arith.constant dense<0.000000e+00> : vector<8x8xf32>
    %27 = tpu.matmul %24, %25, %cst_18 {dimension_numbers = #tpu.dot_dimension_numbers<[1], [1], [0], [0], [0, 0, 1, 0], [], []>} : vector<8x256xf32>, vector<8x256xf32>, vector<8x8xf32> -> vector<8x8xf32>
    %28 = vector.broadcast %26 : vector<1x8xf32> to vector<8x8xf32>
    %29 = arith.addf %27, %28 : vector<8x8xf32>
    %c0_19 = arith.constant 0 : index
    %c0_20 = arith.constant 0 : index
    %30 = vector.load %arg4[%c0_19, %c0_20] : memref<8x8xf32, #tpu.memory_space<vmem>>, vector<8x8xf32>
    tpu.vector_store %arg4[%c0_19, %c0_20], %29 {strides = array<i32>} : memref<8x8xf32, #tpu.memory_space<vmem>>, vector<8x8xf32>,
    return
  }
}

</mosaic_0001>

<bundles_post_ra>
// kernel: _forward_jit.1
= control target key start
LH: loop header
LB: loop body
LE: loop exit
PB: predicated region body
PF: predicated region fallthrough
CT: control target
= control target key end

     0   :  { %v656_v0 = vmov 0.0|0.0   ;;  %vm657_vm0 = vmmov 0   ;;  %v658_v4 = vmov 0.0   ;;  %vm25_vm1 = vcmask 261120   ;;  %s829_s2 = inlined_call_operand.vmem [shape: f32[136,256], index: 2, kind: input, shape index: {}]   ;;  %s830_s0 = inlined_call_operand.vmem [shape: f32[24,32], index: 0, kind: input, shape index: {}]   ;;  %s831_s3 = inlined_call_operand.vmem [shape: f32[8,256], index: 3, kind: input, shape index: {}]   ;;  %s832_s1 = inlined_call_operand.vmem [shape: f32[24,24], index: 1, kind: input, shape index: {}]   ;;  %s833_s4 = inlined_call_operand.vmem [shape: f32[8,8], index: 4, kind: output, shape index: {}]  }
   0x1   :  { %610 = vmatprep.subr.bf16.mxu0 %v656_v0  ;;  %v17_v1 = vld [vmem:[%s829_s2 + $0xc0] sm:$0xff]  ;;  %v18_v2 = vld [vmem:[%s829_s2 + $0xd0] sm:$0xff]  ;;  %586 = vmatprep.mubr.msk.f32.mxu0 %vm657_vm0, %v658_v4  ;;  %v23_v9 = vld [vmem:[%s830_s0 + $0x8] sm:$0xff]  ;;  %vm121_vm2 = vcmask 195584   ;;  %vm549_vm3 = vcmask 64512  }
   0x2   :  { %v19_v3 = vld [vmem:[%s829_s2 + $0xe0] sm:$0xff]  ;;  %v611_v5 = vpack.c.bf16 %v18_v2, %v17_v1  ;;  %v20_v6 = vld [vmem:[%s829_s2 + $0xf0] sm:$0xff]  ;;  %616 = vmatprep.subr.bf16.mxu1 %v656_v0  ;;  %601 = vmatprep.mubr.msk.f32.mxu1 %vm657_vm0, %v658_v4  ;;  %v222_v11 = vld [vmem:[%s829_s2 + $0x48] sm:$0xff] }
   0x3   :  { %v614_v7 = vpack.c.bf16 %v20_v6, %v19_v3  ;;  %v22_v8 = vld [vmem:[%s830_s0] sm:$0xff]  ;;  %v24_v10 = vld [vmem:[%s830_s0 + $0x10] sm:$0xff]  ;;  %v224_v12 = vld [vmem:[%s829_s2 + $0x58] sm:$0xff] }
   0x4   :  { %612 = vmatpush3.bf16.msra.mxu0 %v611_v5  ;;  %v221_v13 = vld [vmem:[%s829_s2 + $0x40] sm:$0xff]  ;;  %v223_v14 = vld [vmem:[%s829_s2 + $0x50] sm:$0xff]  ;;  %v619_v15 = vpack.c.bf16 %v224_v12, %v222_v11  ;;  %v214_v30 = vld [vmem:[%s829_s2 + $0x8] sm:$0xff] }
   0x5   :  { %613 = vmatprep.subr.bf16.mxu0 %v656_v0  ;;  %v621_v16 = vpack.c.bf16 %v223_v14, %v221_v13  ;;  %v21_v17 = vld [vmem:[%s831_s3] ss:$0 sm:$0xff]  ;;  %v216_v31 = vld [vmem:[%s829_s2 + $0x18] sm:$0xff]  ;;  %v215_v33 = vld [vmem:[%s829_s2 + $0x10] sm:$0xff] }
   0x6   :  { %v213_v32 = vld [vmem:[%s829_s2] sm:$0xff]  ;;  %v218_v34 = vld [vmem:[%s829_s2 + $0x28] sm:$0xff]  ;;  %v220_v35 = vld [vmem:[%s829_s2 + $0x38] sm:$0xff]  ;;  %v627_v37 = vpack.c.bf16 %v216_v31, %v214_v30 }
   0x7   :  { %v118_v38 = vld [vmem:[%s832_s1] sm:$0xff]  ;;  %v629_v39 = vpack.c.bf16 %v215_v33, %v213_v32  ;;  %v631_v40 = vpack.c.bf16 %v220_v35, %v218_v34  ;;  %v219_v42 = vld [vmem:[%s829_s2 + $0x30] sm:$0xff]  ;;  %v119_v43 = vld [vmem:[%s832_s1 + $0x8] sm:$0xff] }
   0x8   :  { %615 = vmatpush3.bf16.msra.mxu0 %v614_v7  ;;  %v217_v41 = vld [vmem:[%s829_s2 + $0x20] sm:$0xff]  ;;  %v120_v45 = vld [vmem:[%s832_s1 + $0x10] sm:$0xff]  ;;  %v378_v46 = vld [vmem:[%s829_s2 + $0x88] sm:$0xff] }
   0x9   :  { %620 = vmatprep.subr.bf16.mxu0 %v619_v15  ;;  %v633_v44 = vpack.c.bf16 %v219_v42, %v217_v41  ;;  %v380_v47 = vld [vmem:[%s829_s2 + $0x98] sm:$0xff]  ;;  %v226_v48 = vld [vmem:[%s829_s2 + $0x68] sm:$0xff]  ;;  %v225_v52 = vld [vmem:[%s829_s2 + $0x60] sm:$0xff] }
   0xa   :  { %v635_v49 = vpack.c.bf16 %v380_v47, %v378_v46  ;;  %v228_v50 = vld [vmem:[%s829_s2 + $0x78] sm:$0xff]  ;;  %v227_v53 = vld [vmem:[%s829_s2 + $0x70] sm:$0xff]  ;;  %v377_v55 = vld [vmem:[%s829_s2 + $0x80] sm:$0xff] }
   0xb   :  { %587 = vmatmul.mubr.msk.f32.vlgmr.msra.gmra.mrb[0].mxu0 %vm25_vm1, %v22_v8  ;;  %v623_v51 = vpack.c.bf16 %v228_v50, %v226_v48  ;;  %v625_v54 = vpack.c.bf16 %v227_v53, %v225_v52  ;;  %v379_v56 = vld [vmem:[%s829_s2 + $0x90] sm:$0xff]  ;;  %v382_v57 = vld [vmem:[%s829_s2 + $0xa8] sm:$0xff]  ;;  %v384_v58 = vld [vmem:[%s829_s2 + $0xb8] sm:$0xff] }
   0xc   :  { %589 = vmatprep.mubr.msk.f32.mxu0 %vm657_vm0, %v658_v4  ;;  %622 = vmatpush1.bf16.msra.mxu0 %v621_v16  ;;  %v637_v59 = vpack.c.bf16 %v379_v56, %v377_v55  ;;  %v639_v60 = vpack.c.bf16 %v384_v58, %v382_v57  ;;  %v381_v61 = vld [vmem:[%s829_s2 + $0xa0] sm:$0xff]  ;;  %v383_v62 = vld [vmem:[%s829_s2 + $0xb0] sm:$0xff]  ;;  %v477_v7 = vld [vmem:[%s829_s2 + $0x108] sm:$0xff] }
   0xd   :  { %624 = vmatprep.subr.bf16.mxu0 %v623_v51  ;;  %v641_v1 = vpack.c.bf16 %v383_v62, %v381_v61  ;;  %v476_v8 = vld [vmem:[%s829_s2 + $0x100] sm:$0xff] }
   0xe   :  { %v561_v12 = vld [vmem:[%s831_s3 + $0x1] ss:$8 sm:$0x3] }
   0xf   :  { %590 = vmatmul.mubr.msk.f32.gmra.mrb[2].mxu0 %vm25_vm1, %v23_v9 }
  0x10   :  { %592 = vmatprep.mubr.msk.f32.mxu0 %vm657_vm0, %v658_v4  ;;  %626 = vmatpush1.bf16.msra.mxu0 %v625_v54 }
  0x11   :  { %479 = vmatprep.subr.mxu0 %v477_v7 }
  0x13   :  { %593 = vmatmul.mubr.msk.f32.gmra.mrb[4].mxu0 %vm25_vm1, %v24_v10 }
  0x14   :  { %296 = vmatprep.mubr.f32.mxu0 %v658_v4 }
  0xde   :  { %v101_v18 = vpop.f32.mrb[0].mxu0 }
  0xdf   :  { %v588_v19 = vpop.f32.mrb[1].mxu0  ;;  %v102_v20 = vadd.f32 %v101_v18, %v21_v17 }
  0xe1   :  { %650 = vtanh.f32 %v102_v20 }
  0xe2   :  { %v106_v21 = vpop.f32.mrb[2].mxu0 }
  0xe3   :  { %v107_v22 = vadd.f32 %v106_v21, %v21_v17  ;;  %v591_v23 = vpop.f32.mrb[3].mxu0 }
  0xe5   :  { %652 = vtanh.f32 %v107_v22 }
  0xe6   :  { %v111_v24 = vpop.f32.mrb[4].mxu0 }
  0xe7   :  { %v112_v25 = vadd.f32 %v111_v24, %v21_v17  ;;  %v594_v26 = vpop.f32.mrb[5].mxu0 }
  0xe9   :  { %654 = vtanh.f32 %v112_v25  ;;  %v478_v25 = vld [vmem:[%s831_s3 + $0x2] ss:$0 sm:$0xff] }
  0xeb   :  { %v651_v27 = vpop.eup %650 }
  0xef   :  { %v653_v28 = vpop.eup %652 }
  0xf0   :  { %v617_v29 = vpack.c.bf16 %v653_v28, %v651_v27 }
  0xf2   :  { %618 = vmatpush3.bf16.msra.mxu1 %v617_v29 }
  0xf3   :  { %v655_v36 = vpop.eup %654  ;;  %599 = vmatprep.subr.mxu1 %v658_v4 }
  0xf6   :  { %600 = vmatpush3.msra.mxu1 %v655_v36 }
  0xf7   :  { %602 = vmatmul.mubr.msk.f32.vlgmr.msra.gmra.mrb[0].mxu1 %vm121_vm2, %v118_v38  ;;  %628 = vmatprep.subr.bf16.mxu1 %v627_v37 }
  0xf8   :  { %604 = vmatprep.mubr.msk.f32.mxu1 %vm657_vm0, %v658_v4  ;;  %630 = vmatpush1.bf16.msra.mxu1 %v629_v39 }
  0xf9   :  { %632 = vmatprep.subr.bf16.mxu1 %v631_v40 }
  0xfb   :  { %605 = vmatmul.mubr.msk.f32.gmra.mrb[2].mxu1 %vm121_vm2, %v119_v43 }
  0xfc   :  { %607 = vmatprep.mubr.msk.f32.mxu1 %vm657_vm0, %v658_v4  ;;  %634 = vmatpush1.bf16.msra.mxu1 %v633_v44 }
  0xfd   :  { %636 = vmatprep.subr.bf16.mxu1 %v635_v49 }
  0xff   :  { %608 = vmatmul.mubr.msk.f32.gmra.mrb[4].mxu1 %vm121_vm2, %v120_v45 }
 0x100   :  { %370 = vmatprep.mubr.f32.mxu1 %v658_v4 }
 0x1ca   :  { %v197_v63 = vpop.f32.mrb[0].mxu1 }
 0x1cb   :  { %v603_v0 = vpop.f32.mrb[1].mxu1  ;;  %563 = vmatmul.mubr.msk.f32.vlgmr.msra.gmra.mrb[6].mxu1 %vm25_vm1, %v197_v63 }
 0x1cc   :  { %638 = vmatpush1.bf16.msra.mxu1 %v637_v59  ;;  %452 = vmatprep.mubr.f32.mxu1 %v658_v4  ;;  %v462_v4 = vlaneseq }
 0x1cd   :  { %640 = vmatprep.subr.bf16.mxu1 %v639_v60 }
 0x1ce   :  { %v202_v2 = vpop.f32.mrb[2].mxu1  ;;  %v463_v9 = vshrl.u32 %v462_v4, 7 }
 0x1cf   :  { %v606_v3 = vpop.f32.mrb[3].mxu1  ;;  %562 = vmatmul.mubr.msk.f32.vlgmr.msra.gmra.mrb[6].mxu0 %vm25_vm1, %v202_v2 }
 0x1d0   :  { %642 = vmatpush1.bf16.msra.mxu1 %v641_v1  ;;  %480 = vmatpush1.xpose.msra.mxu0 %v476_v8  ;;  %v464_v10 = vsub.s32 0, %v463_v9  ;;  %v468_v13 = vsub.s32 1, %v463_v9 }
 0x1d2   :  { %v207_v5 = vpop.f32.mrb[4].mxu1  ;;  %v465_v15 = vrot.slane %v561_v12, %v464_v10  ;;  %v469_v17 = vrot.slane %v561_v12, %v468_v13 }
 0x1d3   :  { %v609_v6 = vpop.f32.mrb[5].mxu1  ;;  %564 = vmatmul.mubr.msk.f32.vlgmr.msra.gmra.mrb[6].mxu1 %vm25_vm1, %v207_v5 }
 0x2a2   :  { %v298_v11 = vpop.f32.mrb[6].mxu0 }
 0x2a3   :  { %v300_v14 = vpop.f32.mrb[7].mxu0 }
 0x2a6   :  { %v454_v16 = vpop.f32.mrb[6].mxu1 }
 0x2a7   :  { %v643_v18 = vadd.f32 %v454_v16, %v298_v11  ;;  %v456_v19 = vpop.f32.mrb[7].mxu1 }
 0x2a8   :  { %v644_v20 = vadd.f32 %v456_v19, %v300_v14 }
 0x2a9   :  { %v472_v21 = vadd.f32 %v643_v18, %v465_v15 }
 0x2aa   :  { %v473_v22 = vadd.f32 %v644_v20, %v469_v17 }
 0x2ab   :  { %v474_v24 = vmax.f32 %v472_v21, 0.0 }
 0x2ac   :  { %v475_v23 = vmax.f32 %v473_v22, 0.0 }
 0x2ae   :  { %543 = vmatprep.mubr.f32.mxu0 %v475_v23 }
 0x2af   :  { %544 = vmatmul.mubr.f32.vlgmr.msra.gmra.mrb[8].mxu0 %v474_v24 }
 0x382   :  { %v545_v26 = vpop.f32.mrb[8].mxu0 }
 0x383   :  { %v546_v27 = vadd.f32 %v545_v26, %v478_v25  ;;  %v547_v28 = vpop.f32.mrb[9].mxu0 }
 0x385   :  { %550 = vst.msk [vmem:[%s833_s4] sm:$0xff] %vm549_vm3, %v546_v27 }

</bundles_post_ra>
